<compile_context>
chip_gen: v6e
topology: v6e:2x2x1
jax: 0.10.0
libtpu: 0.0.40
codegen_flags: <defaults>
</compile_context>

<pallas_src>
import functools

import jax
import jax.numpy as jnp
from jax.experimental import pallas as pl
from jax.experimental.pallas import tpu as pltpu

_LANES = 128
_ACC_ROWS = 32  # accumulator sublanes (4 vregs per 128 lanes -> 4-way add ILP)


def _num_tensorcores():
    """Best-effort TensorCores per chip (2 on v7x, 1 on v5e/v6e)."""
    try:
        info = pltpu.get_tpu_info()
    except Exception:
        return 1
    for name in ("num_cores", "core_count", "tensor_core_count", "num_tensorcores"):
        v = getattr(info, name, None)
        try:
            v = int(v)
        except (TypeError, ValueError):
            continue
        if v > 0:
            return max(1, min(v, 2))
    return 1


def _l1_loss_kernel(pred_ref, gt_ref, acc_ref, *, clamp, clamp_min, clamp_max,
                    block_rows, acc_rows, valid_rows, needs_mask):
    """One grid step: accumulate (acc_rows, cols) partial sums of |pred - clamp(gt)|."""
    p = pl.program_id(0)          # parallel axis (per-TensorCore on v7x)
    s = pl.program_id(1)          # reduction axis ("arbitrary", innermost)

    @pl.when(s == 0)
    def _():
        acc_ref[...] = jnp.zeros_like(acc_ref)

    x = pred_ref[...].astype(jnp.float32)
    g = gt_ref[...].astype(jnp.float32)
    if clamp:  # static, baked from clamp_config
        g = jnp.clip(g, jnp.float32(clamp_min), jnp.float32(clamp_max))
    d = jnp.abs(x - g)

    if needs_mask:
        # Zero rows past the logical end of the data (ragged / fully-OOB blocks).
        steps = pl.num_programs(1)
        row0 = (p * steps + s) * block_rows
        rem = valid_rows - row0                      # may be <= 0 for OOB blocks
        row_ids = jax.lax.broadcasted_iota(jnp.int32, d.shape, 0)
        d = jnp.where(row_ids < rem, d, 0.0)

    # (block_rows, cols) -> (groups, acc_rows, cols); summing axis 0 is pure
    # VPU adds with acc_rows/8-way vreg ILP. The cross-lane reduce happens
    # once, outside the kernel.
    cols = d.shape[-1]
    groups = block_rows // acc_rows
    acc_ref[...] += jnp.sum(d.reshape(groups, acc_rows, cols), axis=0)


def l1_loss(pred, gt, *, clamp=False, clamp_min=0.0, clamp_max=1.0,
            block_bytes=4 << 20, num_parallel=None):
    """Mean L1 loss between pred and gt (optional clamp of gt).

    Matches torch: loss = (pred - clamp(gt)).abs().mean() over all elements.
    Works for any shape; inputs may be f32 or bf16 (accumulation in f32).
    """
    assert pred.shape == gt.shape
    total = int(pred.size)
    assert total > 0

    if num_parallel is None:
        num_parallel = _num_tensorcores()
    num_parallel = max(1, int(num_parallel))

    # Free (contiguous) 2-D view of the data; prefer fully lane-dense (rows, 128).
    if total % _LANES == 0:
        view = (total // _LANES, _LANES)
    elif pred.ndim >= 2:
        view = (total // pred.shape[-1], pred.shape[-1])
    else:
        view = (1, total)
    # TODO(synk): a non-128-multiple total combined with a huge last dim makes a
    # single block exceed VMEM; fall back to a padded copy in that rare case.
    pred2d = pred.reshape(view)
    gt2d = gt.reshape(view)
    R, C = view

    itemsize = jnp.dtype(pred.dtype).itemsize

    if R < _ACC_ROWS:
        # Tiny input: single full-extent block on one core (block dims equal the
        # full array dims, so no (8,128) divisibility requirement applies).
        num_parallel = 1
        acc_rows = R
        block_rows = R
    else:
        acc_rows = _ACC_ROWS
        rows_target = max(acc_rows, block_bytes // max(1, C * itemsize))
        block_rows = min(rows_target, R)
        block_rows = max(acc_rows, (block_rows // acc_rows) * acc_rows)

    blocks_total = pl.cdiv(R, block_rows)
    num_parallel = min(num_parallel, blocks_total)
    steps = pl.cdiv(blocks_total, num_parallel)
    needs_mask = (num_parallel * steps * block_rows) != R

    kernel = functools.partial(
        _l1_loss_kernel, clamp=clamp, clamp_min=clamp_min, clamp_max=clamp_max,
        block_rows=block_rows, acc_rows=acc_rows, valid_rows=R,
        needs_mask=needs_mask)

    # Clamp the block index so grid points past the last block never index OOB;
    # their contribution is zeroed by the in-kernel row mask.
    last_block = blocks_total - 1

    def in_map(p, s):
        return (jnp.minimum(p * steps + s, last_block), 0)

    block_bytes_actual = block_rows * C * itemsize
    vmem_limit = int(min(max(4 * block_bytes_actual + (8 << 20), 16 << 20), 56 << 20))

    cost = pl.CostEstimate(
        flops=(5 if clamp else 3) * total,
        transcendentals=0,
        bytes_accessed=2 * total * itemsize + num_parallel * acc_rows * C * 4)

    partials = pl.pallas_call(
        kernel,
        out_shape=jax.ShapeDtypeStruct((num_parallel * acc_rows, C), jnp.float32),
        grid_spec=pltpu.PrefetchScalarGridSpec(
            num_scalar_prefetch=0,
            grid=(num_parallel, steps),
            in_specs=[
                pl.BlockSpec((block_rows, C), in_map),
                pl.BlockSpec((block_rows, C), in_map),
            ],
            # Same block index across the reduction axis -> VMEM-resident
            # per-core accumulator block, written back once per p.
            out_specs=pl.BlockSpec((acc_rows, C), lambda p, s: (p, 0)),
        ),
        compiler_params=pltpu.CompilerParams(
            dimension_semantics=("parallel", "arbitrary"),
            vmem_limit_bytes=vmem_limit,
        ),
        cost_estimate=cost,
    )(pred2d, gt2d)

    # Tiny epilogue: cross-lane reduce of per-core vreg-shaped partials + mean.
    return jnp.sum(partials) / jnp.float32(total)


if __name__ == "__main__":
    # Deterministic "clamp_config": clamp enabled with min/max bounds.
    CLAMP = True
    CLAMP_MIN = -0.5
    CLAMP_MAX = 0.5

    key = jax.random.PRNGKey(0)
    k1, k2, k3, k4, k5, k6 = jax.random.split(key, 6)

    # Case 1: clamp enabled, non-128 trailing dim (flattens to a lane-dense
    # (12, 128) view with no padding; single full-extent block).
    pred = jax.random.normal(k1, (16, 96), dtype=jnp.float32)
    gt = jax.random.normal(k2, (16, 96), dtype=jnp.float32)
    loss = jax.block_until_ready(
        l1_loss(pred, gt, clamp=CLAMP, clamp_min=CLAMP_MIN, clamp_max=CLAMP_MAX))
    ref = jnp.mean(jnp.abs(pred - jnp.clip(gt, CLAMP_MIN, CLAMP_MAX)))
    assert jnp.allclose(loss, ref, rtol=1e-6, atol=1e-6), (loss, ref)

    # Case 2: no clamp; small block_bytes + num_parallel=2 exercises the
    # (parallel x arbitrary) grid, ragged-tail masking and index clamping.
    pred2 = jax.random.normal(k3, (60, 128), dtype=jnp.float32)
    gt2 = jax.random.normal(k4, (60, 128), dtype=jnp.float32)
    loss2 = jax.block_until_ready(
        l1_loss(pred2, gt2, clamp=False, block_bytes=16 * 1024, num_parallel=2))
    ref2 = jnp.mean(jnp.abs(pred2 - gt2))
    assert jnp.allclose(loss2, ref2, rtol=1e-6, atol=1e-6), (loss2, ref2)

    # Case 3: bf16 inputs with clamp; total not a multiple of 128, so the
    # original (8, 40) view with a ragged lane dim is used directly (no pad).
    pred3 = jax.random.normal(k5, (8, 40), dtype=jnp.bfloat16)
    gt3 = jax.random.normal(k6, (8, 40), dtype=jnp.bfloat16)
    loss3 = jax.block_until_ready(
        l1_loss(pred3, gt3, clamp=CLAMP, clamp_min=CLAMP_MIN, clamp_max=CLAMP_MAX))
    ref3 = jnp.mean(jnp.abs(pred3.astype(jnp.float32) -
                            jnp.clip(gt3.astype(jnp.float32), CLAMP_MIN, CLAMP_MAX)))
    assert jnp.allclose(loss3, ref3, rtol=1e-4, atol=1e-4), (loss3, ref3)

    print("KERNEL_OK")
</pallas_src>

<mosaic_0001>
module attributes {stable_mosaic.version = 11 : i64} {
  func.func @_l1_loss_kernel(%arg0: i32, %arg1: i32, %arg2: memref<12x128xf32, #tpu.memory_space<vmem>>, %arg3: memref<12x128xf32, #tpu.memory_space<vmem>>, %arg4: memref<12x128xf32, #tpu.memory_space<vmem>>) attributes {dimension_semantics = [#tpu.dimension_semantics<parallel>, #tpu.dimension_semantics<arbitrary>], iteration_bounds = array<i64: 1, 1>, scalar_prefetch = 0 : i64, scratch_operands = 0 : i64, tpu.core_type = #tpu.core_type<tc>, window_params = [{transform_indices = @transform_0, window_bounds = array<i64: 12, 128>}, {transform_indices = @transform_1, window_bounds = array<i64: 12, 128>}, {transform_indices = @transform_2, window_bounds = array<i64: 12, 128>}]} {
    %c0_i32 = arith.constant 0 : i32
    %0 = arith.cmpi eq, %arg1, %c0_i32 : i32
    %1 = arith.extui %0 : i1 to i32
    %c0_i32_0 = arith.constant 0 : i32
    %2 = arith.cmpi ne, %1, %c0_i32_0 : i32
    scf.if %2 {
      %cst_10 = arith.constant 0.000000e+00 : f32
      %16 = vector.broadcast %cst_10 : f32 to vector<12x128xf32>
      %c0_11 = arith.constant 0 : index
      %c0_12 = arith.constant 0 : index
      %17 = vector.load %arg4[%c0_11, %c0_12] : memref<12x128xf32, #tpu.memory_space<vmem>>, vector<12x128xf32>
      tpu.vector_store %arg4[%c0_11, %c0_12], %16 {strides = array<i32>} : memref<12x128xf32, #tpu.memory_space<vmem>>, vector<12x128xf32>,
    } else {
    }
    %c0 = arith.constant 0 : index
    %c0_1 = arith.constant 0 : index
    %3 = vector.load %arg2[%c0, %c0_1] : memref<12x128xf32, #tpu.memory_space<vmem>>, vector<12x128xf32>
    %c0_2 = arith.constant 0 : index
    %c0_3 = arith.constant 0 : index
    %4 = vector.load %arg3[%c0_2, %c0_3] : memref<12x128xf32, #tpu.memory_space<vmem>>, vector<12x128xf32>
    %cst = arith.constant -5.000000e-01 : f32
    %cst_4 = arith.constant 5.000000e-01 : f32
    %5 = vector.broadcast %cst : f32 to vector<12x128xf32>
    %6 = arith.maximumf %5, %4 : vector<12x128xf32>
    %7 = vector.broadcast %cst_4 : f32 to vector<12x128xf32>
    %8 = arith.minimumf %7, %6 : vector<12x128xf32>
    %9 = arith.subf %3, %8 : vector<12x128xf32>
    %10 = math.absf %9 : vector<12x128xf32>
    %c0_5 = arith.constant 0 : index
    %c0_6 = arith.constant 0 : index
    %11 = vector.load %arg4[%c0_5, %c0_6] : memref<12x128xf32, #tpu.memory_space<vmem>>, vector<12x128xf32>
    %12 = vector.shape_cast %10 : vector<12x128xf32> to vector<1x12x128xf32>
    %cst_7 = arith.constant dense<0.000000e+00> : vector<12x128xf32>
    %13 = vector.multi_reduction <add>, %12, %cst_7 [0] : vector<1x12x128xf32> to vector<12x128xf32>
    %14 = arith.addf %11, %13 : vector<12x128xf32>
    %c0_8 = arith.constant 0 : index
    %c0_9 = arith.constant 0 : index
    %15 = vector.load %arg4[%c0_8, %c0_9] : memref<12x128xf32, #tpu.memory_space<vmem>>, vector<12x128xf32>
    tpu.vector_store %arg4[%c0_8, %c0_9], %14 {strides = array<i32>} : memref<12x128xf32, #tpu.memory_space<vmem>>, vector<12x128xf32>,
    return
  }
  func.func @transform_0(%arg0: i32, %arg1: i32) -> (i32, i32) {
    %c1_i32 = arith.constant 1 : i32
    %0 = arith.muli %arg0, %c1_i32 : i32
    %1 = arith.addi %0, %arg1 : i32
    %c0_i32 = arith.constant 0 : i32
    %2 = arith.minsi %1, %c0_i32 : i32
    %c0_i32_0 = arith.constant 0 : i32
    %c0_i32_1 = arith.constant 0 : i32
    return %2, %c0_i32_0 : i32, i32
  }
  func.func @transform_1(%arg0: i32, %arg1: i32) -> (i32, i32) {
    %c1_i32 = arith.constant 1 : i32
    %0 = arith.muli %arg0, %c1_i32 : i32
    %1 = arith.addi %0, %arg1 : i32
    %c0_i32 = arith.constant 0 : i32
    %2 = arith.minsi %1, %c0_i32 : i32
    %c0_i32_0 = arith.constant 0 : i32
    %c0_i32_1 = arith.constant 0 : i32
    return %2, %c0_i32_0 : i32, i32
  }
  func.func @transform_2(%arg0: i32, %arg1: i32) -> (i32, i32) {
    %c0_i32 = arith.constant 0 : i32
    %c0_i32_0 = arith.constant 0 : i32
    return %arg0, %c0_i32 : i32, i32
  }
}

</mosaic_0001>

<bundles_post_ra>
// kernel: tpu_custom_call.1
= control target key start
LH: loop header
LB: loop body
LE: loop exit
PB: predicated region body
PF: predicated region fallthrough
CT: control target
= control target key end

     0   :  { %7 = vsyncpa [#allocation3], 0  ;;  %s221_s0 = inlined_call_operand.hbm [shape: f32[12,128], index: 0, kind: input, shape index: {}]   ;;  %s222_s1 = inlined_call_operand.hbm [shape: f32[12,128], index: 1, kind: input, shape index: {}]   ;;  %s223_s2 = inlined_call_operand.hbm [shape: f32[12,128], index: 2, kind: output, shape index: {}]  }
   0x1   :  { %8 = vsyncpa [#allocation6], 0 }
   0x2   :  { %9 = vsyncpa [#allocation4], 0  ;;  %s182_s9 = smov [#allocation2]  }
   0x3   :  { %s21_s10 = sshll.u32 %s182_s9, 4  ;;  %s22_s10 = int_to_ptr.vmem [resolvable:$true] %s21_s10 }
   0x4   :  { %s124_s11 = scalar_lea.vmem %s22_s10, 256  ;;  %p129_p1 = scmp.lt.s32.totalorder %s22_s10, %s22_s10 }
   0x5   :  { %p125_p0 = scmp.ne.s32.totalorder %s22_s10, %s124_s11  ;;  %p130_p2 = scmp.lt.s32.totalorder %s124_s11, %s124_s11 }
   0x7   :  { %p131_p3 = por %p130_p2, %p129_p1 }
   0x9   :  { %p132_p4 = pnand %p131_p3, %p125_p0 }
   0xb   :  { %135 = shalt.err (!%p132_p4)
}
   0xc   :  { %s183_s12 = smov 128   ;;  %s184_s13 = smov 8  }
   0xd   :  { %27 = dma.hbm_to_vmem [thread:$0]  %s221_s0, 256, %s22_s10, [#allocation3], %s183_s12, %s183_s12, %s184_s13  }
   0xe   :  { %s185_s16 = smov [#allocation5]  }
   0xf   :  { %s39_s17 = sshll.u32 %s185_s16, 4  ;;  %s40_s17 = int_to_ptr.vmem [resolvable:$true] %s39_s17 }
  0x10   :  { %s144_s18 = scalar_lea.vmem %s40_s17, 256  ;;  %p149_p6 = scmp.lt.s32.totalorder %s40_s17, %s40_s17 }
  0x11   :  { %p145_p5 = scmp.ne.s32.totalorder %s40_s17, %s144_s18  ;;  %p150_p7 = scmp.lt.s32.totalorder %s144_s18, %s144_s18 }
  0x13   :  { %p151_p8 = por %p150_p7, %p149_p6 }
  0x15   :  { %p152_p9 = pnand %p151_p8, %p145_p5 }
  0x17   :  { %155 = shalt.err (!%p152_p9)
}
  0x18   :  { %45 = dma.hbm_to_vmem [thread:$0]  %s222_s1, 256, %s40_s17, [#allocation6], %s183_s12, %s183_s12, %s184_s13  }
  0x19   :  { %176 = dma.done.wait [#allocation3], 256  }
  0x1a   :  { %177 = vsyncadd [#allocation3], 4294967040 }
  0x1b   :  { %178 = dma.done.wait [#allocation6], 256  }
  0x1c   :  { %179 = vsyncadd [#allocation6], 4294967040  ;;  %v186_v0 = vmov 0.0   ;;  %v66_v1 = vld [vmem:[#allocation2] sm:$0xff]  ;;  %v68_v2 = vld [vmem:[#allocation5] sm:$0xff]  ;;  %s187_s0 = smov [#allocation7]  }
  0x1d   :  { %65 = vst [vmem:[#allocation7 + $0x8] sm:$0xf] %v186_v0  ;;  %v108_v3 = vclamps-f32 %v68_v2, 0.5  ;;  %v67_v4 = vld [vmem:[#allocation2 + $0x8] sm:$0xf]  ;;  %s91_s21 = sshll.u32 %s187_s0, 4  ;;  %s92_s21 = int_to_ptr.vmem [resolvable:$true] %s91_s21 }
  0x1e   :  { %v69_v5 = vld [vmem:[#allocation5 + $0x8] sm:$0xf]  ;;  %s156_s1 = scalar_lea.vmem %s92_s21, 256  ;;  %p161_p11 = scmp.lt.s32.totalorder %s92_s21, %s92_s21 }
  0x1f   :  { %v109_v6 = vclamps-f32 %v69_v5, 0.5  ;;  %v74_v7 = vsub.f32 %v66_v1, %v108_v3  ;;  %p157_p10 = scmp.ne.s32.totalorder %s92_s21, %s156_s1  ;;  %p162_p12 = scmp.lt.s32.totalorder %s156_s1, %s156_s1 }
  0x21   :  { %v75_v8 = vsub.f32 %v67_v4, %v109_v6  ;;  %v76_v9 = vand.u32 2147483647, %v74_v7  ;;  %p163_p13 = por %p162_p12, %p161_p11 }
  0x23   :  { %v77_v11 = vand.u32 2147483647, %v75_v8  ;;  %84 = vst [vmem:[#allocation7] sm:$0xff] %v76_v9  ;;  %p164_p0 = pnand %p163_p13, %p157_p10 }
  0x24   :  { %v79_v10 = vld [vmem:[#allocation7 + $0x8] sm:$0xf] }
  0x25   :  { %v83_v12 = vadd.f32 %v79_v10, %v77_v11 }
  0x27   :  { %85 = vst [vmem:[#allocation7 + $0x8] sm:$0xf] %v83_v12 }
  0x28   :  { %167 = shalt.err (!%p164_p0)
}
  0x29   :  { %97 = dma.vmem_to_hbm [thread:$0]  %s92_s21, 256, %s223_s2, [#allocation4], %s183_s12, %s183_s12, %s184_s13  }
  0x2a   :  { %180 = dma.done.wait [#allocation4], 256  }
  0x2b   :  { %181 = vsyncadd [#allocation4], 4294967040 }
  0x2c   :  { %101 = vsyncpa [#allocation3], 1 }
  0x2d   :  { %102 = vsyncpa [#allocation6], 1 }
  0x2e   :  { %103 = vsyncpa [#allocation4], 1 }

</bundles_post_ra>
